<compile_context>
chip_gen: v5e
topology: v5e:2x2
jax: 0.10.0
libtpu: 0.0.40
codegen_flags: <defaults>
</compile_context>

<pallas_src>
import math
import functools

import jax
import jax.numpy as jnp
from jax import lax
from jax.experimental import pallas as pl
from jax.experimental.pallas import tpu as pltpu


# ---------------------------------------------------------------------------
# in-kernel math helpers
# ---------------------------------------------------------------------------
def _gelu(x):
    # tanh-based GELU: 0.5*x*(1+tanh(sqrt(2/pi)*(x+0.044715*x^3))); tanh -> EUP.
    c = math.sqrt(2.0 / math.pi)
    return 0.5 * x * (1.0 + jnp.tanh(c * (x + 0.044715 * (x * x * x))))


def _layer_norm(x, w, b, eps=1e-12):
    # matches BertLayerNorm: biased variance over last axis, eps inside sqrt.
    # rsqrt on the (S,1) stats + (S,H) multiply instead of an (S,H) divide.
    u = jnp.mean(x, axis=-1, keepdims=True)
    d = x - u
    s = jnp.mean(d * d, axis=-1, keepdims=True)
    return w * (d * lax.rsqrt(s + eps)) + b


# ---------------------------------------------------------------------------
# fused BertLayer kernel (one grid step == one batch element)
# ---------------------------------------------------------------------------
def bert_layer_kernel(hs_ref, mask_ref,
                      wqkv_ref, bqkv_ref, wo_ref, bo_ref,
                      ln1w_ref, ln1b_ref,
                      wi_ref, bi_ref, wo2_ref, bo2_ref,
                      ln2w_ref, ln2b_ref,
                      out_ref, *, num_heads, head_dim):
    S = hs_ref.shape[1]
    H = num_heads * head_dim

    x_bf = hs_ref[0]                                # (S, H) bf16 (carried dtype)
    x = x_bf.astype(jnp.float32)                    # f32 residual copy
    mask_row = mask_ref[0]                          # (1, S) additive mask, f32

    # ---- fused Q/K/V projection: one wide lane-dense matmul -----------------
    # 1/sqrt(Dh) is already folded into the Q columns of wqkv/bqkv (init time).
    qkv = jnp.dot(x_bf, wqkv_ref[...],
                  preferred_element_type=jnp.float32) + bqkv_ref[...]   # (S, 3H) f32

    def to_heads(t):                                # (S, H) f32 -> (NH, S, Dh) bf16
        return jnp.transpose(t.reshape(S, num_heads, head_dim),
                             (1, 0, 2)).astype(jnp.bfloat16)

    q3 = to_heads(qkv[:, :H])
    k3 = to_heads(qkv[:, H:2 * H])
    v3 = to_heads(qkv[:, 2 * H:])

    # ---- batched (all heads at once) scores / softmax / context -------------
    s = jnp.einsum('nqd,nkd->nqk', q3, k3,
                   preferred_element_type=jnp.float32)                  # (NH, S, S)
    s = s + mask_row                                # (1,S) broadcasts over (NH,S,S)
    s = s - jnp.max(s, axis=-1, keepdims=True)
    p = jnp.exp(s)
    p = p * pl.reciprocal(jnp.sum(p, axis=-1, keepdims=True), approx=True)

    ctx3 = jnp.einsum('nqk,nkd->nqd', p.astype(jnp.bfloat16), v3,
                      preferred_element_type=jnp.float32)               # (NH, S, Dh)
    ctx = jnp.transpose(ctx3, (1, 0, 2)).reshape(S, H)                  # lane-concat heads

    attn = jnp.dot(ctx.astype(jnp.bfloat16), wo_ref[...],
                   preferred_element_type=jnp.float32) + bo_ref[...]

    # ---- add & LayerNorm (BertSelfOutput), f32 -------------------------------
    y = _layer_norm(attn + x, ln1w_ref[...], ln1b_ref[...])

    # ---- intermediate (gelu) + output dense + add & LayerNorm ----------------
    h = _gelu(jnp.dot(y.astype(jnp.bfloat16), wi_ref[...],
                      preferred_element_type=jnp.float32) + bi_ref[...])
    o = jnp.dot(h.astype(jnp.bfloat16), wo2_ref[...],
                preferred_element_type=jnp.float32) + bo2_ref[...]
    out_ref[0] = _layer_norm(o + y, ln2w_ref[...], ln2b_ref[...]).astype(out_ref.dtype)


# ---------------------------------------------------------------------------
# wrappers
# ---------------------------------------------------------------------------
def _vmem_budget_bytes(S, H, I, NH, weight_bytes):
    """Per-grid-step resident set: pipelined blocks + weights + f32 intermediates."""
    act_block = S * H * 2                      # (1,S,H) bf16
    mask_block = S * 4                         # (1,1,S) f32
    pipelined = 2 * (act_block + mask_block) + 2 * act_block   # in + out, double-buffered
    intermediates = (S * 3 * H * 4             # qkv
                     + 2 * NH * S * S * 4      # scores + probs
                     + 3 * S * H * 4           # ctx / attn / y
                     + S * I * 4)              # gelu intermediate
    return pipelined + weight_bytes + intermediates


def bert_layer(hs, mask, params, num_heads):
    B, S, H = hs.shape
    Dh = H // num_heads
    I = params["wi"].shape[1]
    kernel = functools.partial(bert_layer_kernel, num_heads=num_heads, head_dim=Dh)

    hs = hs.astype(jnp.bfloat16)               # bf16 inter-layer activations
    mask = mask.astype(jnp.float32)

    args = (hs, mask,
            params["wqkv"], params["bqkv"], params["wo"], params["bo"],
            params["ln1_w"], params["ln1_b"],
            params["wi"], params["bi"], params["wo2"], params["bo2"],
            params["ln2_w"], params["ln2_b"])

    # per-batch blocks for activations / mask / output; weights whole-array
    # resident in VMEM (grid-invariant, loaded once).
    vmem_full = pl.BlockSpec(memory_space=pltpu.MemorySpace.VMEM)
    in_specs = ([pl.BlockSpec((1, S, H), lambda b: (b, 0, 0)),
                 pl.BlockSpec((1, 1, S), lambda b: (b, 0, 0))]
                + [vmem_full] * (len(args) - 2))

    weight_bytes = sum(int(a.size) * a.dtype.itemsize for a in args[2:])
    need = _vmem_budget_bytes(S, H, I, num_heads, weight_bytes)
    try:
        cap = int(getattr(pltpu.get_tpu_info(), "vmem_capacity_bytes", 64 << 20))
    except Exception:                           # pragma: no cover - conservative fallback
        cap = 64 << 20
    # floor at the common 32 MiB scoped default, leave ~1/8 headroom below physical.
    vmem_limit = int(min(cap * 7 // 8, max(32 << 20, int(1.5 * need))))

    return pl.pallas_call(
        kernel,
        out_shape=jax.ShapeDtypeStruct((B, S, H), jnp.bfloat16),
        grid=(B,),
        in_specs=in_specs,
        out_specs=pl.BlockSpec((1, S, H), lambda b: (b, 0, 0)),
        compiler_params=pltpu.CompilerParams(
            dimension_semantics=("parallel",),
            vmem_limit_bytes=vmem_limit),
    )(*args)


def bert_encoder(hidden_states, attention_mask, layer_params, num_heads,
                 output_all_encoded_layers=True):
    """Mirrors BertEncoder.forward: returns a list of per-layer outputs."""
    all_encoder_layers = []
    for p in layer_params:
        hidden_states = bert_layer(hidden_states, attention_mask, p, num_heads)
        if output_all_encoded_layers:
            all_encoder_layers.append(hidden_states)
    if not output_all_encoded_layers:
        all_encoder_layers.append(hidden_states)
    return all_encoder_layers


# ---------------------------------------------------------------------------
# deterministic synthetic parameters
# ---------------------------------------------------------------------------
def init_layer_params(key, H, NH, I):
    std = 0.02                      # config.initializer_range
    Dh = H // NH
    ks = jax.random.split(key, 6)
    f32, bf16 = jnp.float32, jnp.bfloat16

    wq = jax.random.normal(ks[0], (H, H), f32) * std
    wk = jax.random.normal(ks[1], (H, H), f32) * std
    wv = jax.random.normal(ks[2], (H, H), f32) * std
    bq = jnp.zeros((H,), f32)
    bk = jnp.zeros((H,), f32)
    bv = jnp.zeros((H,), f32)

    # fold 1/sqrt(Dh) into the Q weight AND bias once, host-side (free).
    scale = 1.0 / math.sqrt(Dh)
    wq = wq * scale
    bq = bq * scale

    return dict(
        # packed (H, 3H) QKV weight: [Wq^T * scale | Wk^T | Wv^T]
        wqkv=jnp.concatenate([wq, wk, wv], axis=1).astype(bf16),
        bqkv=jnp.concatenate([bq, bk, bv])[None, :],   # (1, 3H) f32
        wo=(jax.random.normal(ks[3], (H, H), f32) * std).astype(bf16),
        bo=jnp.zeros((1, H), f32),
        ln1_w=jnp.ones((1, H), f32),
        ln1_b=jnp.zeros((1, H), f32),
        wi=(jax.random.normal(ks[4], (H, I), f32) * std).astype(bf16),
        bi=jnp.zeros((1, I), f32),
        wo2=(jax.random.normal(ks[5], (I, H), f32) * std).astype(bf16),
        bo2=jnp.zeros((1, H), f32),
        ln2_w=jnp.ones((1, H), f32),
        ln2_b=jnp.zeros((1, H), f32),
    )


if __name__ == "__main__":
    # small shapes consistent with the module (scaled-down BertConfig)
    B, S, H, NH, I, L = 2, 8, 32, 4, 64, 2

    key = jax.random.PRNGKey(0)
    k_hs, k_params = jax.random.split(key)

    hidden_states = jax.random.normal(k_hs, (B, S, H), jnp.float32)

    # additive attention mask: batch 0 fully valid, batch 1 pads last 3 tokens
    valid = jnp.array([[1.0] * S, [1.0] * (S - 3) + [0.0] * 3], jnp.float32)  # (B, S)
    attention_mask = ((1.0 - valid) * -10000.0)[:, None, :]                   # (B, 1, S)

    layer_keys = jax.random.split(k_params, L)
    layer_params = [init_layer_params(k, H, NH, I) for k in layer_keys]

    all_layers = bert_encoder(hidden_states, attention_mask, layer_params, NH,
                              output_all_encoded_layers=True)
    jax.block_until_ready(all_layers)
    assert len(all_layers) == L and all_layers[-1].shape == (B, S, H)
    assert bool(jnp.all(jnp.isfinite(all_layers[-1].astype(jnp.float32))))
    print("KERNEL_OK")
</pallas_src>

<mosaic_0001>
module attributes {stable_mosaic.version = 11 : i64} {
  func.func @bert_layer_kernel(%arg0: i32, %arg1: memref<1x8x32xbf16, #tpu.memory_space<vmem>>, %arg2: memref<1x1x8xf32, #tpu.memory_space<vmem>>, %arg3: memref<32x96xbf16, #tpu.memory_space<vmem>>, %arg4: memref<1x96xf32, #tpu.memory_space<vmem>>, %arg5: memref<32x32xbf16, #tpu.memory_space<vmem>>, %arg6: memref<1x32xf32, #tpu.memory_space<vmem>>, %arg7: memref<1x32xf32, #tpu.memory_space<vmem>>, %arg8: memref<1x32xf32, #tpu.memory_space<vmem>>, %arg9: memref<32x64xbf16, #tpu.memory_space<vmem>>, %arg10: memref<1x64xf32, #tpu.memory_space<vmem>>, %arg11: memref<64x32xbf16, #tpu.memory_space<vmem>>, %arg12: memref<1x32xf32, #tpu.memory_space<vmem>>, %arg13: memref<1x32xf32, #tpu.memory_space<vmem>>, %arg14: memref<1x32xf32, #tpu.memory_space<vmem>>, %arg15: memref<1x8x32xbf16, #tpu.memory_space<vmem>>) attributes {dimension_semantics = [#tpu.dimension_semantics<parallel>], iteration_bounds = array<i64: 2>, scalar_prefetch = 0 : i64, scratch_operands = 0 : i64, tpu.core_type = #tpu.core_type<tc>, window_params = [{transform_indices = @transform_0, window_bounds = array<i64: 1, 8, 32>}, {transform_indices = @transform_1, window_bounds = array<i64: 1, 1, 8>}, {pipeline_mode = #tpu.pipeline_mode<synchronous>, transform_indices = @transform_2, window_bounds = array<i64: 32, 96>}, {pipeline_mode = #tpu.pipeline_mode<synchronous>, transform_indices = @transform_3, window_bounds = array<i64: 1, 96>}, {pipeline_mode = #tpu.pipeline_mode<synchronous>, transform_indices = @transform_4, window_bounds = array<i64: 32, 32>}, {pipeline_mode = #tpu.pipeline_mode<synchronous>, transform_indices = @transform_5, window_bounds = array<i64: 1, 32>}, {pipeline_mode = #tpu.pipeline_mode<synchronous>, transform_indices = @transform_6, window_bounds = array<i64: 1, 32>}, {pipeline_mode = #tpu.pipeline_mode<synchronous>, transform_indices = @transform_7, window_bounds = array<i64: 1, 32>}, {pipeline_mode = #tpu.pipeline_mode<synchronous>, transform_indices = @transform_8, window_bounds = array<i64: 32, 64>}, {pipeline_mode = #tpu.pipeline_mode<synchronous>, transform_indices = @transform_9, window_bounds = array<i64: 1, 64>}, {pipeline_mode = #tpu.pipeline_mode<synchronous>, transform_indices = @transform_10, window_bounds = array<i64: 64, 32>}, {pipeline_mode = #tpu.pipeline_mode<synchronous>, transform_indices = @transform_11, window_bounds = array<i64: 1, 32>}, {pipeline_mode = #tpu.pipeline_mode<synchronous>, transform_indices = @transform_12, window_bounds = array<i64: 1, 32>}, {pipeline_mode = #tpu.pipeline_mode<synchronous>, transform_indices = @transform_13, window_bounds = array<i64: 1, 32>}, {transform_indices = @transform_14, window_bounds = array<i64: 1, 8, 32>}]} {
    %c0 = arith.constant 0 : index
    %c0_0 = arith.constant 0 : index
    %c0_1 = arith.constant 0 : index
    %0 = vector.load %arg1[%c0, %c0_0, %c0_1] : memref<1x8x32xbf16, #tpu.memory_space<vmem>>, vector<1x8x32xbf16>
    %1 = vector.shape_cast %0 : vector<1x8x32xbf16> to vector<8x32xbf16>
    %2 = arith.extf %1 : vector<8x32xbf16> to vector<8x32xf32>
    %c0_2 = arith.constant 0 : index
    %c0_3 = arith.constant 0 : index
    %c0_4 = arith.constant 0 : index
    %3 = vector.load %arg2[%c0_2, %c0_3, %c0_4] : memref<1x1x8xf32, #tpu.memory_space<vmem>>, vector<1x1x8xf32>
    %4 = vector.shape_cast %3 : vector<1x1x8xf32> to vector<1x8xf32>
    %c0_5 = arith.constant 0 : index
    %c0_6 = arith.constant 0 : index
    %5 = vector.load %arg3[%c0_5, %c0_6] : memref<32x96xbf16, #tpu.memory_space<vmem>>, vector<32x96xbf16>
    %cst = arith.constant dense<0.000000e+00> : vector<8x96xf32>
    %6 = tpu.matmul %1, %5, %cst {dimension_numbers = #tpu.dot_dimension_numbers<[1], [0], [0], [1], [0, 0, 1, 1], [], []>} : vector<8x32xbf16>, vector<32x96xbf16>, vector<8x96xf32> -> vector<8x96xf32>
    %c0_7 = arith.constant 0 : index
    %c0_8 = arith.constant 0 : index
    %7 = vector.load %arg4[%c0_7, %c0_8] : memref<1x96xf32, #tpu.memory_space<vmem>>, vector<1x96xf32>
    %8 = vector.broadcast %7 : vector<1x96xf32> to vector<8x96xf32>
    %9 = arith.addf %6, %8 : vector<8x96xf32>
    %10 = vector.extract_strided_slice %9 {offsets = [0, 0], sizes = [8, 32], strides = [1, 1]} : vector<8x96xf32> to vector<8x32xf32>
    %11 = vector.shape_cast %10 : vector<8x32xf32> to vector<8x4x8xf32>
    %12 = tpu.transpose %11, [1, 0, 2] : vector<8x4x8xf32> -> vector<4x8x8xf32>
    %13 = arith.truncf %12 : vector<4x8x8xf32> to vector<4x8x8xbf16>
    %14 = vector.extract_strided_slice %9 {offsets = [0, 32], sizes = [8, 32], strides = [1, 1]} : vector<8x96xf32> to vector<8x32xf32>
    %15 = vector.shape_cast %14 : vector<8x32xf32> to vector<8x4x8xf32>
    %16 = tpu.transpose %15, [1, 0, 2] : vector<8x4x8xf32> -> vector<4x8x8xf32>
    %17 = arith.truncf %16 : vector<4x8x8xf32> to vector<4x8x8xbf16>
    %18 = vector.extract_strided_slice %9 {offsets = [0, 64], sizes = [8, 32], strides = [1, 1]} : vector<8x96xf32> to vector<8x32xf32>
    %19 = vector.shape_cast %18 : vector<8x32xf32> to vector<8x4x8xf32>
    %20 = tpu.transpose %19, [1, 0, 2] : vector<8x4x8xf32> -> vector<4x8x8xf32>
    %21 = arith.truncf %20 : vector<4x8x8xf32> to vector<4x8x8xbf16>
    "tpu.trace_start"() <{level = 10 : i32, message = "nqd,nkd->nqk"}> : () -> ()
    %cst_9 = arith.constant dense<0.000000e+00> : vector<4x8x8xf32>
    %22 = tpu.matmul %13, %17, %cst_9 {dimension_numbers = #tpu.dot_dimension_numbers<[2], [2], [1], [1], [0, 0, 0, 1, 1, 1], [0], [0]>} : vector<4x8x8xbf16>, vector<4x8x8xbf16>, vector<4x8x8xf32> -> vector<4x8x8xf32>
    "tpu.trace_stop"() : () -> ()
    %23 = vector.shape_cast %4 : vector<1x8xf32> to vector<1x1x8xf32>
    %24 = vector.broadcast %23 : vector<1x1x8xf32> to vector<4x8x8xf32>
    %25 = arith.addf %22, %24 : vector<4x8x8xf32>
    %cst_10 = arith.constant dense<0xFF800000> : vector<4x8xf32>
    %26 = vector.multi_reduction <maximumf>, %25, %cst_10 [2] : vector<4x8x8xf32> to vector<4x8xf32>
    %27 = vector.shape_cast %26 : vector<4x8xf32> to vector<4x8x1xf32>
    %28 = vector.broadcast %27 : vector<4x8x1xf32> to vector<4x8x8xf32>
    %29 = arith.subf %25, %28 : vector<4x8x8xf32>
    %30 = math.exp %29 : vector<4x8x8xf32>
    %cst_11 = arith.constant dense<0.000000e+00> : vector<4x8xf32>
    %31 = vector.multi_reduction <add>, %30, %cst_11 [2] : vector<4x8x8xf32> to vector<4x8xf32>
    %32 = vector.shape_cast %31 : vector<4x8xf32> to vector<4x8x1xf32>
    %33 = tpu.reciprocal %32 {approx = true} : vector<4x8x1xf32> -> vector<4x8x1xf32>
    %34 = vector.broadcast %33 : vector<4x8x1xf32> to vector<4x8x8xf32>
    %35 = arith.mulf %30, %34 : vector<4x8x8xf32>
    %36 = arith.truncf %35 : vector<4x8x8xf32> to vector<4x8x8xbf16>
    "tpu.trace_start"() <{level = 10 : i32, message = "nqk,nkd->nqd"}> : () -> ()
    %cst_12 = arith.constant dense<0.000000e+00> : vector<4x8x8xf32>
    %37 = tpu.matmul %36, %21, %cst_12 {dimension_numbers = #tpu.dot_dimension_numbers<[2], [1], [1], [2], [0, 0, 0, 1, 1, 2], [0], [0]>} : vector<4x8x8xbf16>, vector<4x8x8xbf16>, vector<4x8x8xf32> -> vector<4x8x8xf32>
    "tpu.trace_stop"() : () -> ()
    %38 = tpu.transpose %37, [1, 0, 2] : vector<4x8x8xf32> -> vector<8x4x8xf32>
    %39 = vector.shape_cast %38 : vector<8x4x8xf32> to vector<8x32xf32>
    %40 = arith.truncf %39 : vector<8x32xf32> to vector<8x32xbf16>
    %c0_13 = arith.constant 0 : index
    %c0_14 = arith.constant 0 : index
    %41 = vector.load %arg5[%c0_13, %c0_14] : memref<32x32xbf16, #tpu.memory_space<vmem>>, vector<32x32xbf16>
    %cst_15 = arith.constant dense<0.000000e+00> : vector<8x32xf32>
    %42 = tpu.matmul %40, %41, %cst_15 {dimension_numbers = #tpu.dot_dimension_numbers<[1], [0], [0], [1], [0, 0, 1, 1], [], []>} : vector<8x32xbf16>, vector<32x32xbf16>, vector<8x32xf32> -> vector<8x32xf32>
    %c0_16 = arith.constant 0 : index
    %c0_17 = arith.constant 0 : index
    %43 = vector.load %arg6[%c0_16, %c0_17] : memref<1x32xf32, #tpu.memory_space<vmem>>, vector<1x32xf32>
    %44 = vector.broadcast %43 : vector<1x32xf32> to vector<8x32xf32>
    %45 = arith.addf %42, %44 : vector<8x32xf32>
    %46 = arith.addf %45, %2 : vector<8x32xf32>
    %c0_18 = arith.constant 0 : index
    %c0_19 = arith.constant 0 : index
    %47 = vector.load %arg7[%c0_18, %c0_19] : memref<1x32xf32, #tpu.memory_space<vmem>>, vector<1x32xf32>
    %c0_20 = arith.constant 0 : index
    %c0_21 = arith.constant 0 : index
    %48 = vector.load %arg8[%c0_20, %c0_21] : memref<1x32xf32, #tpu.memory_space<vmem>>, vector<1x32xf32>
    %cst_22 = arith.constant dense<0.000000e+00> : vector<8xf32>
    %49 = vector.multi_reduction <add>, %46, %cst_22 [1] : vector<8x32xf32> to vector<8xf32>
    %50 = vector.shape_cast %49 : vector<8xf32> to vector<8x1xf32>
    %cst_23 = arith.constant 3.200000e+01 : f32
    %51 = vector.broadcast %cst_23 : f32 to vector<8x1xf32>
    %52 = arith.divf %50, %51 : vector<8x1xf32>
    %53 = vector.broadcast %52 : vector<8x1xf32> to vector<8x32xf32>
    %54 = arith.subf %46, %53 : vector<8x32xf32>
    %55 = arith.mulf %54, %54 : vector<8x32xf32>
    %cst_24 = arith.constant dense<0.000000e+00> : vector<8xf32>
    %56 = vector.multi_reduction <add>, %55, %cst_24 [1] : vector<8x32xf32> to vector<8xf32>
    %57 = vector.shape_cast %56 : vector<8xf32> to vector<8x1xf32>
    %cst_25 = arith.constant 3.200000e+01 : f32
    %58 = vector.broadcast %cst_25 : f32 to vector<8x1xf32>
    %59 = arith.divf %57, %58 : vector<8x1xf32>
    %cst_26 = arith.constant 9.99999996E-13 : f32
    %60 = vector.broadcast %cst_26 : f32 to vector<8x1xf32>
    %61 = arith.addf %59, %60 : vector<8x1xf32>
    %62 = math.rsqrt %61 : vector<8x1xf32>
    %63 = vector.broadcast %62 : vector<8x1xf32> to vector<8x32xf32>
    %64 = arith.mulf %54, %63 : vector<8x32xf32>
    %65 = vector.broadcast %47 : vector<1x32xf32> to vector<8x32xf32>
    %66 = arith.mulf %65, %64 : vector<8x32xf32>
    %67 = vector.broadcast %48 : vector<1x32xf32> to vector<8x32xf32>
    %68 = arith.addf %66, %67 : vector<8x32xf32>
    %69 = arith.truncf %68 : vector<8x32xf32> to vector<8x32xbf16>
    %c0_27 = arith.constant 0 : index
    %c0_28 = arith.constant 0 : index
    %70 = vector.load %arg9[%c0_27, %c0_28] : memref<32x64xbf16, #tpu.memory_space<vmem>>, vector<32x64xbf16>
    %cst_29 = arith.constant dense<0.000000e+00> : vector<8x64xf32>
    %71 = tpu.matmul %69, %70, %cst_29 {dimension_numbers = #tpu.dot_dimension_numbers<[1], [0], [0], [1], [0, 0, 1, 1], [], []>} : vector<8x32xbf16>, vector<32x64xbf16>, vector<8x64xf32> -> vector<8x64xf32>
    %c0_30 = arith.constant 0 : index
    %c0_31 = arith.constant 0 : index
    %72 = vector.load %arg10[%c0_30, %c0_31] : memref<1x64xf32, #tpu.memory_space<vmem>>, vector<1x64xf32>
    %73 = vector.broadcast %72 : vector<1x64xf32> to vector<8x64xf32>
    %74 = arith.addf %71, %73 : vector<8x64xf32>
    %cst_32 = arith.constant 5.000000e-01 : f32
    %75 = vector.broadcast %cst_32 : f32 to vector<8x64xf32>
    %76 = arith.mulf %75, %74 : vector<8x64xf32>
    %77 = arith.mulf %74, %74 : vector<8x64xf32>
    %78 = arith.mulf %77, %74 : vector<8x64xf32>
    %cst_33 = arith.constant 4.471500e-02 : f32
    %79 = vector.broadcast %cst_33 : f32 to vector<8x64xf32>
    %80 = arith.mulf %79, %78 : vector<8x64xf32>
    %81 = arith.addf %74, %80 : vector<8x64xf32>
    %cst_34 = arith.constant 0.797884583 : f32
    %82 = vector.broadcast %cst_34 : f32 to vector<8x64xf32>
    %83 = arith.mulf %82, %81 : vector<8x64xf32>
    %84 = math.tanh %83 : vector<8x64xf32>
    %cst_35 = arith.constant 1.000000e+00 : f32
    %85 = vector.broadcast %cst_35 : f32 to vector<8x64xf32>
    %86 = arith.addf %85, %84 : vector<8x64xf32>
    %87 = arith.mulf %76, %86 : vector<8x64xf32>
    %88 = arith.truncf %87 : vector<8x64xf32> to vector<8x64xbf16>
    %c0_36 = arith.constant 0 : index
    %c0_37 = arith.constant 0 : index
    %89 = vector.load %arg11[%c0_36, %c0_37] : memref<64x32xbf16, #tpu.memory_space<vmem>>, vector<64x32xbf16>
    %cst_38 = arith.constant dense<0.000000e+00> : vector<8x32xf32>
    %90 = tpu.matmul %88, %89, %cst_38 {dimension_numbers = #tpu.dot_dimension_numbers<[1], [0], [0], [1], [0, 0, 1, 1], [], []>} : vector<8x64xbf16>, vector<64x32xbf16>, vector<8x32xf32> -> vector<8x32xf32>
    %c0_39 = arith.constant 0 : index
    %c0_40 = arith.constant 0 : index
    %91 = vector.load %arg12[%c0_39, %c0_40] : memref<1x32xf32, #tpu.memory_space<vmem>>, vector<1x32xf32>
    %92 = vector.broadcast %91 : vector<1x32xf32> to vector<8x32xf32>
    %93 = arith.addf %90, %92 : vector<8x32xf32>
    %94 = arith.addf %93, %68 : vector<8x32xf32>
    %c0_41 = arith.constant 0 : index
    %c0_42 = arith.constant 0 : index
    %95 = vector.load %arg13[%c0_41, %c0_42] : memref<1x32xf32, #tpu.memory_space<vmem>>, vector<1x32xf32>
    %c0_43 = arith.constant 0 : index
    %c0_44 = arith.constant 0 : index
    %96 = vector.load %arg14[%c0_43, %c0_44] : memref<1x32xf32, #tpu.memory_space<vmem>>, vector<1x32xf32>
    %cst_45 = arith.constant dense<0.000000e+00> : vector<8xf32>
    %97 = vector.multi_reduction <add>, %94, %cst_45 [1] : vector<8x32xf32> to vector<8xf32>
    %98 = vector.shape_cast %97 : vector<8xf32> to vector<8x1xf32>
    %cst_46 = arith.constant 3.200000e+01 : f32
    %99 = vector.broadcast %cst_46 : f32 to vector<8x1xf32>
    %100 = arith.divf %98, %99 : vector<8x1xf32>
    %101 = vector.broadcast %100 : vector<8x1xf32> to vector<8x32xf32>
    %102 = arith.subf %94, %101 : vector<8x32xf32>
    %103 = arith.mulf %102, %102 : vector<8x32xf32>
    %cst_47 = arith.constant dense<0.000000e+00> : vector<8xf32>
    %104 = vector.multi_reduction <add>, %103, %cst_47 [1] : vector<8x32xf32> to vector<8xf32>
    %105 = vector.shape_cast %104 : vector<8xf32> to vector<8x1xf32>
    %cst_48 = arith.constant 3.200000e+01 : f32
    %106 = vector.broadcast %cst_48 : f32 to vector<8x1xf32>
    %107 = arith.divf %105, %106 : vector<8x1xf32>
    %cst_49 = arith.constant 9.99999996E-13 : f32
    %108 = vector.broadcast %cst_49 : f32 to vector<8x1xf32>
    %109 = arith.addf %107, %108 : vector<8x1xf32>
    %110 = math.rsqrt %109 : vector<8x1xf32>
    %111 = vector.broadcast %110 : vector<8x1xf32> to vector<8x32xf32>
    %112 = arith.mulf %102, %111 : vector<8x32xf32>
    %113 = vector.broadcast %95 : vector<1x32xf32> to vector<8x32xf32>
    %114 = arith.mulf %113, %112 : vector<8x32xf32>
    %115 = vector.broadcast %96 : vector<1x32xf32> to vector<8x32xf32>
    %116 = arith.addf %114, %115 : vector<8x32xf32>
    %117 = arith.truncf %116 : vector<8x32xf32> to vector<8x32xbf16>
    %c0_50 = arith.constant 0 : index
    %c0_51 = arith.constant 0 : index
    %c0_52 = arith.constant 0 : index
    %118 = vector.load %arg15[%c0_50, %c0_51, %c0_52] : memref<1x8x32xbf16, #tpu.memory_space<vmem>>, vector<1x8x32xbf16>
    %119 = vector.shape_cast %118 : vector<1x8x32xbf16> to vector<8x32xbf16>
    %120 = vector.shape_cast %117 : vector<8x32xbf16> to vector<1x8x32xbf16>
    tpu.vector_store %arg15[%c0_50, %c0_51, %c0_52], %120 {strides = array<i32>} : memref<1x8x32xbf16, #tpu.memory_space<vmem>>, vector<1x8x32xbf16>,
    return
  }
  func.func @transform_0(%arg0: i32) -> (i32, i32, i32) {
    %c0_i32 = arith.constant 0 : i32
    %c0_i32_0 = arith.constant 0 : i32
    %c0_i32_1 = arith.constant 0 : i32
    return %arg0, %c0_i32, %c0_i32_0 : i32, i32, i32
  }
  func.func @transform_1(%arg0: i32) -> (i32, i32, i32) {
    %c0_i32 = arith.constant 0 : i32
    %c0_i32_0 = arith.constant 0 : i32
    %c0_i32_1 = arith.constant 0 : i32
    return %arg0, %c0_i32, %c0_i32_0 : i32, i32, i32
  }
  func.func @transform_2(%arg0: i32) -> (i32, i32) {
    %c0_i32 = arith.constant 0 : i32
    %c0_i32_0 = arith.constant 0 : i32
    %c0_i32_1 = arith.constant 0 : i32
    return %c0_i32, %c0_i32_0 : i32, i32
  }
  func.func @transform_3(%arg0: i32) -> (i32, i32) {
    %c0_i32 = arith.constant 0 : i32
    %c0_i32_0 = arith.constant 0 : i32
    %c0_i32_1 = arith.constant 0 : i32
    return %c0_i32, %c0_i32_0 : i32, i32
  }
  func.func @transform_4(%arg0: i32) -> (i32, i32) {
    %c0_i32 = arith.constant 0 : i32
    %c0_i32_0 = arith.constant 0 : i32
    %c0_i32_1 = arith.constant 0 : i32
    return %c0_i32, %c0_i32_0 : i32, i32
  }
  func.func @transform_5(%arg0: i32) -> (i32, i32) {
    %c0_i32 = arith.constant 0 : i32
    %c0_i32_0 = arith.constant 0 : i32
    %c0_i32_1 = arith.constant 0 : i32
    return %c0_i32, %c0_i32_0 : i32, i32
  }
  func.func @transform_6(%arg0: i32) -> (i32, i32) {
    %c0_i32 = arith.constant 0 : i32
    %c0_i32_0 = arith.constant 0 : i32
    %c0_i32_1 = arith.constant 0 : i32
    return %c0_i32, %c0_i32_0 : i32, i32
  }
  func.func @transform_7(%arg0: i32) -> (i32, i32) {
    %c0_i32 = arith.constant 0 : i32
    %c0_i32_0 = arith.constant 0 : i32
    %c0_i32_1 = arith.constant 0 : i32
    return %c0_i32, %c0_i32_0 : i32, i32
  }
  func.func @transform_8(%arg0: i32) -> (i32, i32) {
    %c0_i32 = arith.constant 0 : i32
    %c0_i32_0 = arith.constant 0 : i32
    %c0_i32_1 = arith.constant 0 : i32
    return %c0_i32, %c0_i32_0 : i32, i32
  }
  func.func @transform_9(%arg0: i32) -> (i32, i32) {
    %c0_i32 = arith.constant 0 : i32
    %c0_i32_0 = arith.constant 0 : i32
    %c0_i32_1 = arith.constant 0 : i32
    return %c0_i32, %c0_i32_0 : i32, i32
  }
  func.func @transform_10(%arg0: i32) -> (i32, i32) {
    %c0_i32 = arith.constant 0 : i32
    %c0_i32_0 = arith.constant 0 : i32
    %c0_i32_1 = arith.constant 0 : i32
    return %c0_i32, %c0_i32_0 : i32, i32
  }
  func.func @transform_11(%arg0: i32) -> (i32, i32) {
    %c0_i32 = arith.constant 0 : i32
    %c0_i32_0 = arith.constant 0 : i32
    %c0_i32_1 = arith.constant 0 : i32
    return %c0_i32, %c0_i32_0 : i32, i32
  }
  func.func @transform_12(%arg0: i32) -> (i32, i32) {
    %c0_i32 = arith.constant 0 : i32
    %c0_i32_0 = arith.constant 0 : i32
    %c0_i32_1 = arith.constant 0 : i32
    return %c0_i32, %c0_i32_0 : i32, i32
  }
  func.func @transform_13(%arg0: i32) -> (i32, i32) {
    %c0_i32 = arith.constant 0 : i32
    %c0_i32_0 = arith.constant 0 : i32
    %c0_i32_1 = arith.constant 0 : i32
    return %c0_i32, %c0_i32_0 : i32, i32
  }
  func.func @transform_14(%arg0: i32) -> (i32, i32, i32) {
    %c0_i32 = arith.constant 0 : i32
    %c0_i32_0 = arith.constant 0 : i32
    %c0_i32_1 = arith.constant 0 : i32
    return %arg0, %c0_i32, %c0_i32_0 : i32, i32, i32
  }
}

</mosaic_0001>

<bundles_post_ra>
// kernel: tpu_custom_call.1
= control target key start
LH: loop header
LB: loop body
LE: loop exit
PB: predicated region body
PF: predicated region fallthrough
CT: control target
= control target key end

     0   :  { %s2448_s0 = inlined_call_operand.hbm [shape: bf16[2,8,32], index: 0, kind: input, shape index: {}]   ;;  %s2449_s1 = inlined_call_operand.hbm [shape: f32[2,1,8], index: 1, kind: input, shape index: {}]   ;;  %s2450_s2 = inlined_call_operand.vmem [shape: bf16[32,96], index: 2, kind: input, shape index: {}]   ;;  %s2451_s3 = inlined_call_operand.vmem [shape: f32[1,96], index: 3, kind: input, shape index: {}]   ;;  %s2452_s4 = inlined_call_operand.vmem [shape: bf16[32,32], index: 4, kind: input, shape index: {}]   ;;  %s2453_s5 = inlined_call_operand.vmem [shape: f32[1,32], index: 5, kind: input, shape index: {}]   ;;  %s2454_s6 = inlined_call_operand.vmem [shape: f32[1,32], index: 6, kind: input, shape index: {}]   ;;  %s2455_s7 = inlined_call_operand.vmem [shape: f32[1,32], index: 7, kind: input, shape index: {}]   ;;  %s2456_s8 = inlined_call_operand.vmem [shape: bf16[32,64], index: 8, kind: input, shape index: {}]   ;;  %s2457_s9 = inlined_call_operand.vmem [shape: f32[1,64], index: 9, kind: input, shape index: {}]   ;;  %s2458_s10 = inlined_call_operand.vmem [shape: bf16[64,32], index: 10, kind: input, shape index: {}]   ;;  %s2459_s11 = inlined_call_operand.vmem [shape: f32[1,32], index: 11, kind: input, shape index: {}]   ;;  %s2460_s12 = inlined_call_operand.vmem [shape: f32[1,32], index: 12, kind: input, shape index: {}]   ;;  %s2461_s13 = inlined_call_operand.vmem [shape: f32[1,32], index: 13, kind: input, shape index: {}]   ;;  %s2462_s14 = inlined_call_operand.hbm [shape: bf16[2,8,32], index: 14, kind: output, shape index: {}]  }
   0x1   :  { %2471 = sst [smem:[#allocation17_spill]] %s2448_s0 }
   0x2   :  { %2472 = sst [smem:[#allocation18_spill]] %s2461_s13 }
   0x3   :  { %2473 = sst [smem:[#allocation19_spill]] %s2462_s14 }
   0x4   :  { %19 = vsyncpa [#allocation3], 0 }
   0x5   :  { %21 = vsyncpa [#allocation3 + $0x1], 0 }
   0x6   :  { %22 = vsyncpa [#allocation6], 0 }
   0x7   :  { %24 = vsyncpa [#allocation6 + $0x1], 0 }
   0x8   :  { %25 = vsyncpa [#allocation4], 0 }
   0x9   :  { %27 = vsyncpa [#allocation4 + $0x1], 0  ;;  %s1995_s29 = smov 0   ;;  %s1997_s30 = smov 0  }
   0xa   :  { %s1999_s15 = smov 0   ;;  %s2001_s16 = smov 0  }
   0xb LB: > { %2474 = sst [smem:[#allocation11_spill]] %s1895_s29  ;;  %s2016_s17 = sadd.s32 4294967295, %s1907_s16   ;;  %s1907_s16 = sphi %s2001_s16, %s2493_s16   ;;  %s1903_s15 = sphi %s1999_s15, %s2495_s15   ;;  %s1899_s30 = sphi %s1997_s30, %s2497_s30   ;;  %s1895_s29 = sphi %s1995_s29, %s2496_s29  }
   0xc   : > { %2475 = sst [smem:[#allocation12_spill]] %s1903_s15  ;;  %s1588_s18 = sadd.s32 4294967294, %s1907_s16  }
   0xd   : > { %s2020_s19 = sadd.s32 1, %s1907_s16   ;;  %s40_s20 = sadd.s32 1, %s1903_s15 }
   0xe   : > { %2476 = sst [smem:[#allocation13_spill]] %s2020_s19  ;;  %s37_s21 = ssub.s32 %s1907_s16, %s2020_s19 }
   0xf   : > { %p47_p0 = scmp.ne.s32.totalorder %s1903_s15, %s1899_s30  ;;  %p38_p1 = scmp.eq.s32.totalorder %s37_s21, 0 }
  0x10   : > { %p48_p2 = scmp.eq.s32.totalorder %s1907_s16, 0  ;;  %p53_p3 = scmp.ne.s32.totalorder %s1899_s30, %s1895_s29 }
  0x11   : > { %p54_p4 = scmp.eq.s32.totalorder %s2016_s17, 0  ;;  %p355_p7 = scmp.eq.s32.totalorder %s2016_s17, 1 }
  0x12   : > { %s2032_s22 = scalar_select %p38_p1, %s1903_s15, %s40_s20  }
  0x13   : > { %p2034_p5 = por %p48_p2, %p47_p0  ;;  %p2038_p6 = por %p54_p4, %p53_p3 }
  0x14   : > { %2477 = sst [smem:[#allocation14_spill]] %s2032_s22  ;;  %p361_p8 = scmp.eq.s32.totalorder %s1588_s18, 1 }
  0x15   : > { %p1679_p10 = scmp.lt.s32.totalorder %s1907_s16, 2  ;;  %p2045_p11 = por %p355_p7, %p47_p0 }
  0x16   : > { %p2049_p12 = por %p361_p8, %p53_p3  ;;  %s2054_s27 = sand.u32 1, %s1903_s15  }
  0x17   : > { %s2480_s25 = scalar_select %p2045_p11, 1, 0 }
  0x18   : > { %s2482_s26 = scalar_select %p2049_p12, 1, 0 }
  0x19   : > { %2481 = sst [smem:[#allocation15_spill]] %s2480_s25  ;;  %s1592_s28 = sshll.u32 %s1907_s16, 2 }
  0x1a   : > { %2483 = sst [smem:[#allocation16_spill]] %s2482_s26  ;;  %s1591_s20 = sshll.u32 %s2054_s27, 2 }
  0x1b   : > { %s2484_s0 = sld [smem:[#allocation17_spill]]  ;;  %s421_s29 = scalar_lea.vmem [#allocation2], %s1591_s20 }
  0x1c   : > { %s429_s14 = sshll.u32 %s421_s29, 4  ;;  %p2063_p13 = pnand %p1679_p10, %p2034_p5  ;;  %s430_s14 = int_to_ptr.vmem [resolvable:$true] %s429_s14 }
  0x1d   : > { %p1593_p0 = scmp.ge.s32.totalorder %s1907_s16, 1  ;;  %p451_p1 = scmp.lt.s32.totalorder %s1907_s16, 3 }
  0x1e   : > { %s418_s15 = scalar_lea.sflag [#allocation3], %s2054_s27  ;;  %p1781_p3 = pneg %p2063_p13 }
  0x21   : > { %s425_s18 = scalar_lea.hbm %s2484_s0, %s1592_s28  ;;  %s1784_s23 = scalar_lea.hbm %s2484_s0, 8 }
  0x22   : > { %s427_s19 = sshll.u32 %s425_s18, 4  ;;  %s428_s19 = int_to_ptr.hbm [resolvable:$true] %s427_s19 }
  0x23   : > { %s1777_s26 = sshra.s32 %s428_s19, 4  ;;  %s1778_s26 = int_to_ptr.hbm [resolvable:$true] %s1777_s26 }
  0x24   : > { %s1779_s13 = scalar_lea.hbm %s1778_s26, 4  ;;  %p1785_p5 = scmp.lt.s32.totalorder %s1778_s26, %s2484_s0 }
  0x25   : > { %p1780_p2 = scmp.ne.s32.totalorder %s1778_s26, %s1779_s13  ;;  %p1786_p8 = scmp.lt.s32.totalorder %s1784_s23, %s1779_s13 }
  0x27   : > { %p1782_p4 = pnand %p1781_p3, %p1780_p2  ;;  %p1787_p10 = por %p1786_p8, %p1785_p5 }
  0x29   : > { %p1783_p7 = pneg %p1782_p4 }
  0x2b   : > { %p1788_p9 = pnand %p1787_p10, %p1783_p7 }
  0x2d   : > { %1791 = shalt.err (!%p1788_p9)
}
  0x2e   : > { %1671 = dma.hbm_to_vmem [thread:$0]  (!%p2063_p13), %s428_s19, 64, %s430_s14, %s418_s15  }
  0x2f   : > { %p2087_p2 = pnand %p1593_p0, %p451_p1  ;;  %s442_s18 = scalar_lea.hbm %s2449_s1, %s1907_s16 }
  0x30   : > { %s444_s29 = sshll.u32 %s442_s18, 4  ;;  %s439_s22 = scalar_lea.vmem [#allocation5], %s2054_s27  ;;  %s445_s29 = int_to_ptr.hbm [resolvable:$true] %s444_s29 }
  0x31   : > { %s446_s23 = sshll.u32 %s439_s22, 4  ;;  %s437_s28 = scalar_lea.sflag [#allocation6], %s2054_s27  ;;  %s447_s23 = int_to_ptr.vmem [resolvable:$true] %s446_s23 }
  0x32   : > { %s1807_s20 = sshra.s32 %s445_s29, 4  ;;  %s1814_s19 = scalar_lea.hbm %s2449_s1, 2  ;;  %s1808_s20 = int_to_ptr.hbm [resolvable:$true] %s1807_s20 }
  0x33   : > { %s1809_s0 = scalar_lea.hbm %s1808_s20, 1  ;;  %p1815_p4 = scmp.lt.s32.totalorder %s1808_s20, %s2449_s1 }
  0x34   : > { %p1810_p9 = scmp.ne.s32.totalorder %s1808_s20, %s1809_s0  ;;  %p1816_p7 = scmp.lt.s32.totalorder %s1814_s19, %s1809_s0 }
  0x36   : > { %p1812_p0 = pnand %p1810_p9, %p1781_p3  ;;  %p1817_p5 = por %p1816_p7, %p1815_p4 }
  0x38   : > { %p1813_p1 = pneg %p1812_p0 }
  0x3a   : > { %p1818_p8 = pnand %p1817_p5, %p1813_p1 }
  0x3c   : > { %1821 = shalt.err (!%p1818_p8)
}
  0x3d   : > { %1674 = dma.hbm_to_vmem [thread:$0]  (!%p2063_p13), %s445_s29, 16, %s447_s23, %s437_s28  }
  0x3e   : > { %455 = sbr.rel (%p2087_p2) target bundleno = 2115 (0x843), region = 76  ;;  %s2111_s27 = sand.u32 (!%p2087_p2), 1, %s1899_s30  }
  0x3f   : > { %s1594_s18 = sshll.u32 (!%p2087_p2), %s2111_s27, 2  ;;  %s458_s22 = scalar_lea.sflag (!%p2087_p2), [#allocation3], %s2111_s27 }
  0x40   : > { %s461_s0 = scalar_lea.vmem (!%p2087_p2), [#allocation2], %s1594_s18 }
  0x43   : > { %1882 = dma.done.wait (%p2038_p6), %s458_s22, 64  }
  0x44   : > { %1884 = vsyncadd (%p2038_p6), %s458_s22, 4294967232  ;;  %s468_s25 = scalar_lea.sflag [#allocation6], %s2111_s27  ;;  %s470_s21 = scalar_lea.vmem [#allocation5], %s2111_s27 }
  0x45   : > { %1886 = dma.done.wait (%p2038_p6), %s468_s25, 16  }
  0x46   : > { %1888 = vsyncadd (%p2038_p6), %s468_s25, 4294967280  ;;  %v1653_v0 = vld [vmem:[%s2450_s2 + $0x8] sm:$0xff]  ;;  %v1652_v1 = vld [vmem:[%s2450_s2] sm:$0xff]  ;;  %vm544_vm0 = vcmask 261120   ;;  %s1909_s24 = smov 104   ;;  %s1910_s19 = smov 120  }
  0x47   : > { %554 = vmatpush.bf16.msra.mxu0 %v1653_v0  ;;  %v2133_v2 = vld [vmem:[%s461_s0] sm:$0xf]  ;;  %s1911_s26 = smov 112   ;;  %s1912_s13 = smov 96   ;;  %v1913_v13 = vmov 1983009808  }
  0x48   : > { %v1744_v3 = vld [vmem:[%s2451_s3] ss:$0 sm:$0xff]  ;;  %v577_v14 = vunpack.c.l.s4 %v1913_v13  ;;  %vm572_vm1 = vcmask 1047556   ;;  %v1914_v27 = vmov 1934713408   ;;  %vm941_vm2 = vcmask 64512  }
  0x49   : > { %v601_v28 = vunpack.c.l.s4 %v1914_v27  ;;  %s1915_s22 = smov 64   ;;  %vm1069_vm3 = vcmask 1043456   ;;  %s1916_s0 = smov 16   ;;  %vm1266_vm4 = vcmask 130048   ;;  %vm1268_vm5 = vcmask 195584  }
  0x4a   : > { %v2148_v18 = vunpack.c.0.s8 %v577_v14  ;;  %s1917_s25 = smov 8   ;;  %vm1430_vm10 = vcmask 523264   ;;  %s2487_s20 = sld [smem:[#allocation18_spill]]  ;;  %vm1481_vm14 = vcmask 257024  }
  0x4b   : > { %555 = vmatpush.bf16.msra.mxu0 %v1652_v1  ;;  %v2158_v33 = vunpack.c.0.s8 %v601_v28 }
  0x4e   : > { %1604 = vmatmul.msk.bf16.vlgmr.msra.gmra.mxu0 %vm544_vm0, %v2133_v2 }
  0xcb   : > { %v557_v4 = vpop.f32.mrf.mxu0 }
  0xcc   : > { %v558_v5 = vadd.f32 %v1744_v3, %v557_v4 }
  0xce   : > { %568 = vrot.lane.b32.xlu1 %v558_v5, %s1909_s24  ;;  %562 = vrot.lane.b32.xlu0 %v558_v5, %s1910_s19  ;;  %v574_v15 = vrot.slane %v558_v5, 4  ;;  %s2488_s24 = sld [smem:[#allocation19_spill]] }
  0xd3   : > { %v559_v6 = vpop.f32.mrf.mxu0 }
  0xd6   : > { %565 = vrot.lane.b32.xlu0 %v558_v5, %s1911_s26 }
 0x140   : > { %v563_v7 = vpop.permute.xlu0 %562  ;;  %v569_v9 = vpop.permute.xlu1 %568 }
 0x141   : > { %v2140_v8 = vpack.i.bf16 %v563_v7, %v558_v5  ;;  %v584_v19 = vrot.slane %v569_v9, 4  ;;  %v586_v20 = vrot.slane %v563_v7, 4 }
 0x143   : > { %1725 = vrot.lane.b32.xlu1 %v2140_v8, %s1912_s13  ;;  %v585_v23 = vsel %vm572_vm1, %v584_v19, %v563_v7  ;;  %v587_v24 = vsel %vm572_vm1, %v569_v9, %v586_v20 }
 0x144   : > { %v591_v29 = vperm.slane %v585_v23, %v2148_v18  ;;  %v595_v30 = vperm.slane %v587_v24, %v2148_v18 }
 0x146   : > { %v596_v34 = vrot.slane %v591_v29, 4  ;;  %v608_v35 = vrot.slane %v595_v30, 4 }
 0x148   : > { %v566_v10 = vpop.permute.xlu0 %565 }
 0x149   : > { %v2143_v11 = vpack.i.bf16 %v569_v9, %v566_v10  ;;  %v571_v12 = vrot.slane %v566_v10, 4  ;;  %v575_v17 = vsel %vm572_vm1, %v566_v10, %v574_v15 }
 0x14a   : > { %v583_v22 = vperm.slane %v575_v17, %v2148_v18 }
 0x14b   : > { %1730 = vrot.lane.b32.xlu2 %v2143_v11, %s1912_s13  ;;  %v573_v16 = vsel %vm572_vm1, %v571_v12, %v558_v5 }
 0x14c   : > { %v579_v21 = vperm.slane %v573_v16, %v2148_v18  ;;  %v610_v26 = vrot.slane %v583_v22, 4  ;;  %v609_v40 = vsel %vm572_vm1, %v608_v35, %v583_v22 }
 0x14d   : > { %v615_v44 = vperm.slane %v609_v40, %v2158_v33 }
 0x14e   : > { %v598_v25 = vrot.slane %v579_v21, 4  ;;  %v611_v32 = vsel %vm572_vm1, %v595_v30, %v610_v26  ;;  %v597_v39 = vsel %vm572_vm1, %v596_v34, %v579_v21 }
 0x14f   : > { %v619_v37 = vperm.slane %v611_v32, %v2158_v33  ;;  %v603_v43 = vperm.slane %v597_v39, %v2158_v33  ;;  %v624_v54 = vrot.slane %v615_v44, 4 }
 0x150   : > { %v599_v31 = vsel %vm572_vm1, %v591_v29, %v598_v25 }
 0x151   : > { %v607_v36 = vperm.slane %v599_v31, %v2158_v33  ;;  %v626_v46 = vrot.slane %v619_v37, 4  ;;  %v620_v52 = vrot.slane %v603_v43, 4  ;;  %v625_v10 = vsel %vm572_vm1, 0.0, %v624_v54 }
 0x153   : > { %v622_v45 = vrot.slane %v607_v36, 4  ;;  %v627_v55 = vsel %vm572_vm1, 0.0, %v626_v46  ;;  %v639_v60 = vsel %vm572_vm1, %v626_v46, %v615_v44  ;;  %v621_v9 = vsel %vm572_vm1, 0.0, %v620_v52 }
 0x154   : > { %v644_v0 = vrot.slane %v627_v55, 4  ;;  %v643_v17 = vperm.slane %v639_v60, %v2148_v18 }
 0x155   : > { %v623_v53 = vsel %vm572_vm1, 0.0, %v622_v45  ;;  %v628_v12 = vsel %vm572_vm1, %v622_v45, %v603_v43 }
 0x156   : > { %v633_v63 = vrot.slane %v623_v53, 4  ;;  %v645_v22 = vsel %vm572_vm1, %v644_v0, %v625_v10  ;;  %v632_v25 = vperm.slane %v628_v12, %v2148_v18  ;;  %v664_v39 = vrot.slane %v643_v17, 4 }
 0x157   : > { %v649_v35 = vperm.slane %v645_v22, %v2148_v18 }
 0x158   : > { %v634_v21 = vsel %vm572_vm1, %v633_v63, %v621_v9 }
 0x159   : > { %v638_v30 = vperm.slane %v634_v21, %v2148_v18 }
 0x1a5   : > { %v1731_v38 = vpop.permute.xlu2 %1730 }
 0x1a6   : > { %v1733_v41 = vunpack.i.h.bf16 %v1731_v38  ;;  %v1732_v42 = vunpack.i.l.bf16 %v1731_v38  ;;  %v652_v38 = vrot.slane %v632_v25, 4 }
 0x1a8   : > { %v710_v48 = vrot.slane %v1733_v41, 4  ;;  %v698_v49 = vrot.slane %v1732_v42, 4 }
 0x1b5   : > { %v1726_v47 = vpop.permute.xlu1 %1725 }
 0x1b6   : > { %v1728_v50 = vunpack.i.h.bf16 %v1726_v47  ;;  %v1727_v51 = vunpack.i.l.bf16 %v1726_v47  ;;  %v650_v47 = vrot.slane %v638_v30, 4 }
 0x1b8   : > { %v712_v56 = vrot.slane %v1728_v50, 4  ;;  %v699_v57 = vsel %vm572_vm1, %v698_v49, %v1727_v51  ;;  %v700_v58 = vrot.slane %v1727_v51, 4  ;;  %v711_v59 = vsel %vm572_vm1, %v710_v48, %v1728_v50 }
 0x1b9   : > { %v705_v61 = vperm.slane %v699_v57, %v2148_v18  ;;  %v717_v62 = vperm.slane %v711_v59, %v2148_v18  ;;  %v662_v51 = vrot.slane %v649_v35, 4  ;;  %v653_v57 = vsel %vm572_vm1, %v638_v30, %v652_v38 }
 0x1ba   : > { %v701_v1 = vsel %vm572_vm1, %v1732_v42, %v700_v58  ;;  %v713_v3 = vsel %vm572_vm1, %v1733_v41, %v712_v56  ;;  %v665_v59 = vsel %vm572_vm1, %v649_v35, %v664_v39  ;;  %v651_v60 = vsel %vm572_vm1, %v650_v47, %v632_v25 }
 0x1bb   : > { %v709_v4 = vperm.slane %v701_v1, %v2148_v18  ;;  %v721_v5 = vperm.slane %v713_v3, %v2148_v18  ;;  %v722_v6 = vrot.slane %v717_v62, 4  ;;  %v724_v7 = vrot.slane %v705_v61, 4 }
 0x1bc   : > { %v663_v0 = vsel %vm572_vm1, %v662_v51, %v643_v17  ;;  %v657_v9 = vperm.slane %v651_v60, %v2158_v33 }
 0x1bd   : > { %v723_v13 = vsel %vm572_vm1, %v722_v6, %v705_v61  ;;  %v725_v14 = vsel %vm572_vm1, %v717_v62, %v724_v7  ;;  %v734_v15 = vrot.slane %v721_v5, 4  ;;  %v736_v16 = vrot.slane %v709_v4, 4 }
 0x1be   : > { %v729_v19 = vperm.slane %v723_v13, %v2158_v33  ;;  %v733_v20 = vperm.slane %v725_v14, %v2158_v33  ;;  %v673_v7 = vperm.slane %v665_v59, %v2158_v33 }
 0x1bf   : > { %v735_v23 = vsel %vm572_vm1, %v734_v15, %v709_v4  ;;  %v737_v24 = vsel %vm572_vm1, %v721_v5, %v736_v16  ;;  %v661_v5 = vperm.slane %v653_v57, %v2158_v33  ;;  %v669_v16 = vperm.slane %v663_v0, %v2158_v33 }
 0x1c0   : > { %v741_v26 = vperm.slane %v735_v23, %v2158_v33  ;;  %v745_v27 = vperm.slane %v737_v24, %v2158_v33  ;;  %v746_v28 = vrot.slane %v729_v19, 4  ;;  %v748_v29 = vrot.slane %v733_v20, 4 }
 0x1c1   : > { %v680_v21 = vrot.slane %v661_v5, 4 }
 0x1c2   : > { %v749_v31 = vsel %vm572_vm1, 0.0, %v748_v29  ;;  %v750_v32 = vrot.slane %v741_v26, 4  ;;  %v752_v34 = vrot.slane %v745_v27, 4  ;;  %v754_v36 = vsel %vm572_vm1, %v748_v29, %v729_v19 }
 0x1c3   : > { %v759_v37 = vrot.slane %v749_v31, 4  ;;  %v747_v40 = vsel %vm572_vm1, 0.0, %v746_v28  ;;  %v758_v42 = vperm.slane %v754_v36, %v2148_v18  ;;  %v678_v27 = vrot.slane %v673_v7, 4 }
 0x1c4   : > { %v753_v41 = vsel %vm572_vm1, 0.0, %v752_v34  ;;  %v765_v43 = vsel %vm572_vm1, %v752_v34, %v741_v26  ;;  %v751_v48 = vsel %vm572_vm1, 0.0, %v750_v32  ;;  %v676_v26 = vrot.slane %v657_v9, 4 }
 0x1c5   : > { %v770_v44 = vrot.slane %v753_v41, 4  ;;  %v760_v45 = vsel %vm572_vm1, %v759_v37, %v747_v40  ;;  %v769_v46 = vperm.slane %v765_v43, %v2148_v18  ;;  %v778_v50 = vrot.slane %v758_v42, 4 }
 0x1c6   : > { %v764_v49 = vperm.slane %v760_v45, %v2148_v18  ;;  %v681_v31 = vsel %vm572_vm1, %v673_v7, %v680_v21  ;;  %v674_v32 = vrot.slane %v669_v16, 4  ;;  %v677_v35 = vsel %vm572_vm1, %v669_v16, %v676_v26 }
 0x1c7   : > { %v771_v52 = vsel %vm572_vm1, %v770_v44, %v751_v48  ;;  %v790_v53 = vrot.slane %v769_v46, 4  ;;  %v679_v36 = vsel %vm572_vm1, %v678_v27, %v661_v5  ;;  %v685_v37 = vpack.c.bf16 %v681_v31, %v681_v31 }
 0x1c8   : > { %v775_v54 = vperm.slane %v771_v52, %v2148_v18  ;;  %v779_v55 = vsel %vm572_vm1, %v764_v49, %v778_v50  ;;  %v776_v56 = vrot.slane %v764_v49, 4  ;;  %v675_v38 = vsel %vm572_vm1, %v674_v32, %v657_v9 }
 0x1c9   : > { %v787_v58 = vperm.slane %v779_v55, %v2158_v33  ;;  %v683_v39 = vpack.c.bf16 %v677_v35, %v677_v35  ;;  %v684_v40 = vpack.c.bf16 %v679_v36, %v679_v36  ;;  %v682_v41 = vpack.c.bf16 %v675_v38, %v675_v38 }
 0x1ca   : > { %v791_v61 = vsel %vm572_vm1, %v775_v54, %v790_v53  ;;  %v777_v62 = vsel %vm572_vm1, %v776_v56, %v758_v42  ;;  %v788_v63 = vrot.slane %v775_v54, 4  ;;  %v1745_v42 = vld [vmem:[%s470_s21] ss:$0 sm:$0xff]  ;;  %s1918_s21 = smov 24  }
 0x1cb   : > { %v799_v1 = vperm.slane %v791_v61, %v2158_v33  ;;  %v806_v3 = vrot.slane %v787_v58, 4  ;;  %v783_v4 = vperm.slane %v777_v62, %v2158_v33 }
 0x1cc   : > { %v789_v6 = vsel %vm572_vm1, %v788_v63, %v769_v46 }
 0x1cd   : > { %v807_v10 = vsel %vm572_vm1, %v799_v1, %v806_v3  ;;  %v795_v12 = vperm.slane %v789_v6, %v2158_v33  ;;  %v802_v13 = vrot.slane %v783_v4, 4  ;;  %v804_v14 = vrot.slane %v799_v1, 4 }
 0x1ce   : > { %v811_v15 = vpack.c.bf16 %v807_v10, %v807_v10 }
 0x1cf   : > { %v803_v17 = vsel %vm572_vm1, %v795_v12, %v802_v13  ;;  %v805_v19 = vsel %vm572_vm1, %v804_v14, %v787_v58  ;;  %v800_v20 = vrot.slane %v795_v12, 4 }
 0x1d0   : > { %v1003_v22 = vsel %vm941_vm2, %v811_v15, 0  ;;  %v809_v23 = vpack.c.bf16 %v803_v17, %v803_v17  ;;  %v810_v24 = vpack.c.bf16 %v805_v19, %v805_v19 }
 0x1d1   : > { %1012 = vmatpush.bf16.xpose.msrb.mxu0 %v1003_v22  ;;  %v801_v25 = vsel %vm572_vm1, %v800_v20, %v783_v4 }
 0x1d2   : > { %v965_v28 = vsel %vm941_vm2, %v809_v23, 0  ;;  %v984_v29 = vsel %vm941_vm2, %v810_v24, 0  ;;  %v808_v30 = vpack.c.bf16 %v801_v25, %v801_v25 }
 0x1d3   : > { %974 = vmatpush.bf16.xpose.msra.mxu2 %v965_v28  ;;  %993 = vmatpush.bf16.xpose.msra.mxu3 %v984_v29 }
 0x1d4   : > { %v946_v34 = vsel %vm941_vm2, %v808_v30, 0 }
 0x1d5   : > { %955 = vmatpush.bf16.xpose.msra.mxu1 %v946_v34 }
 0x1d8   : > { %1608 = vmatmul.msk.bf16.vlgmr.msrb.gmra.mxu0 %vm941_vm2, %v685_v37 }
 0x1da   : > { %1606 = vmatmul.msk.bf16.vlgmr.msra.gmra.mxu2 %vm941_vm2, %v683_v39  ;;  %1607 = vmatmul.msk.bf16.vlgmr.msra.gmra.mxu3 %vm941_vm2, %v684_v40 }
 0x1dc   : > { %1605 = vmatmul.msk.bf16.vlgmr.msra.gmra.mxu1 %vm941_vm2, %v682_v41 }
 0x255   : > { %v1014_v43 = vpop.f32.mrf.mxu0 }
 0x256   : > { %v1015_v44 = vadd.f32 %v1745_v42, %v1014_v43 }
 0x258   : > { %v1027_v45 = vsel %vm941_vm2, %v1015_v44, -inf }
 0x259   : > { %1028 = vmax.xlane.f32.xlu2 %v1027_v45  ;;  %v957_v46 = vpop.f32.mrf.mxu1 }
 0x25a   : > { %v958_v47 = vadd.f32 %v1745_v42, %v957_v46 }
 0x25c   : > { %v1018_v48 = vsel %vm941_vm2, %v958_v47, -inf }
 0x25d   : > { %v976_v49 = vpop.f32.mrf.mxu2  ;;  %v995_v50 = vpop.f32.mrf.mxu3  ;;  %1019 = vmax.xlane.f32.xlu1 %v1018_v48 }
 0x25e   : > { %v977_v51 = vadd.f32 %v1745_v42, %v976_v49  ;;  %v996_v52 = vadd.f32 %v1745_v42, %v995_v50  ;;  %v1016_v53 = vpop.f32.mrf.mxu0 }
 0x260   : > { %v1024_v54 = vsel %vm941_vm2, %v996_v52, -inf  ;;  %v1021_v55 = vsel %vm941_vm2, %v977_v51, -inf }
 0x261   : > { %1025 = vmax.xlane.f32.xlu2 %v1024_v54  ;;  %1022 = vmax.xlane.f32.xlu0 %v1021_v55  ;;  %v959_v56 = vpop.f32.mrf.mxu1 }
 0x265   : > { %v978_v57 = vpop.f32.mrf.mxu2  ;;  %v997_v58 = vpop.f32.mrf.mxu3 }
 0x275   : > { %1740 = vrot.lane.b32.xlu0 %v2143_v11, %s1915_s22 }
 0x279   : > { %1735 = vrot.lane.b32.xlu2 %v2140_v8, %s1915_s22 }
 0x2cc   : > { %v1029_v59 = vpop.xlane.xlu2 %1028 }
 0x2cd   : > { %v1033_v60 = vsub.f32 %v1015_v44, %v1029_v59 }
 0x2cf   : > { %v1040_v61 = vmul.f32 1.442695, %v1033_v60 }
 0x2d0   : > { %v1020_v11 = vpop.xlane.xlu1 %1019 }
 0x2d1   : > { %1753 = vpow2.f32 %v1040_v61  ;;  %v1030_v8 = vsub.f32 %v958_v47, %v1020_v11 }
 0x2d3   : > { %v1034_v12 = vmul.f32 1.442695, %v1030_v8 }
 0x2d4   : > { %v1026_v62 = vpop.xlane.xlu2 %1025  ;;  %v1023_v63 = vpop.xlane.xlu0 %1022 }
 0x2d5   : > { %v1032_v0 = vsub.f32 %v996_v52, %v1026_v62  ;;  %v1031_v4 = vsub.f32 %v977_v51, %v1023_v63 }
 0x2d7   : > { %v2246_v1 = vpop.eup %1753  ;;  %v1038_v3 = vmul.f32 1.442695, %v1032_v0  ;;  %v1036_v6 = vmul.f32 1.442695, %v1031_v4 }
 0x2d8   : > { %v1051_v5 = vsel %vm941_vm2, %v2246_v1, 0.0 }
 0x2d9   : > { %1755 = vpow2.f32 %v1038_v3  ;;  %1052 = vadd.xlane.f32.xlu0 %v1051_v5 }
 0x2da   : > { %1757 = vpow2.f32 %v1036_v6 }
 0x2db   : > { %1759 = vpow2.f32 %v1034_v12 }
 0x2dc   : > { %v1736_v9 = vpop.permute.xlu2 %1735 }
 0x2dd   : > { %v1738_v13 = vunpack.i.h.bf16 %v1736_v9  ;;  %v1737_v14 = vunpack.i.l.bf16 %v1736_v9 }
 0x2df   : > { %v2250_v7 = vpop.eup %1755  ;;  %v838_v16 = vrot.slane %v1738_v13, 4  ;;  %v826_v19 = vrot.slane %v1737_v14, 4 }
 0x2e0   : > { %v1048_v10 = vsel %vm941_vm2, %v2250_v7, 0.0  ;;  %v2254_v15 = vpop.eup %1757 }
 0x2e1   : > { %1049 = vadd.xlane.f32.xlu1 %v1048_v10  ;;  %v1045_v22 = vsel %vm941_vm2, %v2254_v15, 0.0  ;;  %v2264_v31 = vpop.eup %1759 }
 0x2e2   : > { %v1042_v43 = vsel %vm941_vm2, %v2264_v31, 0.0 }
 0x2e7   : > { %v1741_v17 = vpop.permute.xlu0 %1740 }
 0x2e8   : > { %v1743_v20 = vunpack.i.h.bf16 %v1741_v17  ;;  %v1742_v21 = vunpack.i.l.bf16 %v1741_v17 }
 0x2e9   : > { %1046 = vadd.xlane.f32.xlu1 %v1045_v22 }
 0x2ea   : > { %v836_v23 = vrot.slane %v1743_v20, 4  ;;  %v839_v24 = vsel %vm572_vm1, %v1743_v20, %v838_v16  ;;  %v824_v25 = vrot.slane %v1742_v21, 4  ;;  %v827_v26 = vsel %vm572_vm1, %v1742_v21, %v826_v19 }
 0x2eb   : > { %v847_v27 = vperm.slane %v839_v24, %v2148_v18  ;;  %v835_v28 = vperm.slane %v827_v26, %v2148_v18 }
 0x2ec   : > { %v837_v29 = vsel %vm572_vm1, %v836_v23, %v1738_v13  ;;  %v825_v30 = vsel %vm572_vm1, %v824_v25, %v1737_v14 }
 0x2ed   : > { %v843_v32 = vperm.slane %v837_v29, %v2148_v18  ;;  %v860_v34 = vrot.slane %v847_v27, 4  ;;  %v831_v35 = vperm.slane %v825_v30, %v2148_v18  ;;  %v862_v36 = vrot.slane %v835_v28, 4 }
 0x2ef   : > { %v848_v37 = vrot.slane %v843_v32, 4  ;;  %v850_v38 = vrot.slane %v831_v35, 4  ;;  %v861_v39 = vsel %vm572_vm1, %v860_v34, %v835_v28  ;;  %v863_v40 = vsel %vm572_vm1, %v847_v27, %v862_v36 }
 0x2f0   : > { %v867_v41 = vperm.slane %v861_v39, %v2158_v33  ;;  %v871_v42 = vperm.slane %v863_v40, %v2158_v33 }
 0x2f1   : > { %v849_v44 = vsel %vm572_vm1, %v848_v37, %v831_v35  ;;  %v851_v45 = vsel %vm572_vm1, %v843_v32, %v850_v38  ;;  %1043 = vadd.xlane.f32.xlu1 %v1042_v43 }
 0x2f2   : > { %v855_v46 = vperm.slane %v849_v44, %v2158_v33  ;;  %v859_v47 = vperm.slane %v851_v45, %v2158_v33  ;;  %v876_v48 = vrot.slane %v867_v41, 4  ;;  %v878_v49 = vrot.slane %v871_v42, 4 }
 0x2f4   : > { %v872_v50 = vrot.slane %v855_v46, 4  ;;  %v874_v51 = vrot.slane %v859_v47, 4  ;;  %v879_v52 = vsel %vm572_vm1, 0.0, %v878_v49  ;;  %v891_v53 = vsel %vm572_vm1, %v878_v49, %v867_v41 }
 0x2f5   : > { %v896_v54 = vrot.slane %v879_v52, 4  ;;  %v877_v56 = vsel %vm572_vm1, 0.0, %v876_v48  ;;  %v895_v58 = vperm.slane %v891_v53, %v2148_v18 }
 0x2f6   : > { %v875_v55 = vsel %vm572_vm1, 0.0, %v874_v51  ;;  %v880_v57 = vsel %vm572_vm1, %v874_v51, %v855_v46  ;;  %v873_v62 = vsel %vm572_vm1, 0.0, %v872_v50 }
 0x2f7   : > { %v885_v59 = vrot.slane %v875_v55, 4  ;;  %v884_v60 = vperm.slane %v880_v57, %v2148_v18  ;;  %v897_v61 = vsel %vm572_vm1, %v896_v54, %v877_v56  ;;  %v916_v0 = vrot.slane %v895_v58, 4 }
 0x2f8   : > { %v901_v63 = vperm.slane %v897_v61, %v2148_v18 }
 0x2f9   : > { %v886_v3 = vsel %vm572_vm1, %v885_v59, %v873_v62  ;;  %v904_v4 = vrot.slane %v884_v60, 4 }
 0x2fa   : > { %v890_v5 = vperm.slane %v886_v3, %v2148_v18  ;;  %v917_v6 = vsel %vm572_vm1, %v901_v63, %v916_v0  ;;  %v914_v11 = vrot.slane %v901_v63, 4 }
 0x2fb   : > { %v925_v8 = vperm.slane %v917_v6, %v2158_v33 }
 0x2fc   : > { %v905_v9 = vsel %vm572_vm1, %v890_v5, %v904_v4  ;;  %v902_v10 = vrot.slane %v890_v5, 4  ;;  %v915_v12 = vsel %vm572_vm1, %v914_v11, %v895_v58 }
 0x2fd   : > { %v913_v13 = vperm.slane %v905_v9, %v2158_v33  ;;  %v930_v14 = vrot.slane %v925_v8, 4  ;;  %v921_v16 = vperm.slane %v915_v12, %v2158_v33 }
 0x2fe   : > { %v903_v17 = vsel %vm572_vm1, %v902_v10, %v884_v60 }
 0x2ff   : > { %v931_v19 = vsel %vm572_vm1, %v930_v14, %v913_v13  ;;  %v932_v20 = vrot.slane %v913_v13, 4  ;;  %v909_v21 = vperm.slane %v903_v17, %v2158_v33  ;;  %v926_v22 = vrot.slane %v921_v16, 4 }
 0x300   : > { %v936_v23 = vpack.c.bf16 %v931_v19, %v931_v19 }
 0x301   : > { %v927_v24 = vsel %vm572_vm1, %v926_v22, %v909_v21  ;;  %v933_v25 = vsel %vm572_vm1, %v925_v8, %v932_v20  ;;  %v928_v26 = vrot.slane %v909_v21, 4 }
 0x302   : > { %v1109_v27 = vsel %vm1069_vm3, %v936_v23, 0  ;;  %v934_v28 = vpack.c.bf16 %v927_v24, %v927_v24  ;;  %v937_v29 = vpack.c.bf16 %v933_v25, %v933_v25 }
 0x303   : > { %1118 = vmatpush.bf16.msrb.mxu3 %v1109_v27  ;;  %v929_v30 = vsel %vm572_vm1, %v921_v16, %v928_v26 }
 0x304   : > { %v1071_v32 = vsel %vm1069_vm3, %v934_v28, 0  ;;  %v1128_v34 = vsel %vm1069_vm3, %v937_v29, 0  ;;  %v935_v35 = vpack.c.bf16 %v929_v30, %v929_v30 }
 0x305   : > { %1080 = vmatpush.bf16.msrb.mxu1 %v1071_v32  ;;  %1137 = vmatpush.bf16.msra.mxu0 %v1128_v34 }
 0x306   : > { %v1090_v36 = vsel %vm1069_vm3, %v935_v35, 0 }
 0x307   : > { %1099 = vmatpush.bf16.msrb.mxu2 %v1090_v36 }
 0x34c   : > { %v1053_v37 = vpop.xlane.xlu0 %1052 }
 0x34d   : > { %1761 = vrcp.f32 %v1053_v37 }
 0x353   : > { %v1762_v38 = vpop.eup %1761 }
 0x354   : > { %v1061_v39 = vmul.f32 %v1762_v38, %v2246_v1  ;;  %v1050_v40 = vpop.xlane.xlu1 %1049 }
 0x355   : > { %1763 = vrcp.f32 %v1050_v40 }
 0x356   : > { %v1065_v41 = vpack.c.bf16 %v1061_v39, %v1061_v39 }
 0x358   : > { %1612 = vmatmul.msk.bf16.vlgmr.msra.gmra.mxu0 %vm941_vm2, %v1065_v41 }
 0x35b   : > { %v1764_v42 = vpop.eup %1763 }
 0x35c   : > { %v1060_v43 = vmul.f32 %v1764_v42, %v2250_v7  ;;  %v1047_v44 = vpop.xlane.xlu1 %1046 }
 0x35d   : > { %1765 = vrcp.f32 %v1047_v44 }
 0x35e   : > { %v1064_v45 = vpack.c.bf16 %v1060_v43, %v1060_v43 }
 0x360   : > { %1611 = vmatmul.msk.bf16.vlgmr.msrb.gmra.mxu3 %vm941_vm2, %v1064_v45 }
 0x363   : > { %v1766_v46 = vpop.eup %1765 }
 0x364   : > { %v1059_v47 = vmul.f32 %v1766_v46, %v2254_v15  ;;  %v1044_v48 = vpop.xlane.xlu1 %1043 }
 0x365   : > { %1767 = vrcp.f32 %v1044_v48 }
 0x366   : > { %v1063_v49 = vpack.c.bf16 %v1059_v47, %v1059_v47 }
 0x368   : > { %1610 = vmatmul.msk.bf16.vlgmr.msrb.gmra.mxu2 %vm941_vm2, %v1063_v49 }
 0x36b   : > { %v1768_v1 = vpop.eup %1767 }
 0x36c   : > { %v1058_v50 = vmul.f32 %v1768_v1, %v2264_v31 }
 0x36e   : > { %v1062_v51 = vpack.c.bf16 %v1058_v50, %v1058_v50 }
 0x370   : > { %1609 = vmatmul.msk.bf16.vlgmr.msrb.gmra.mxu1 %vm941_vm2, %v1062_v51 }
 0x3d5   : > { %v1139_v7 = vpop.f32.mrf.mxu0 }
 0x3d6   : > { %v1155_v54 = vrot.slane %v1139_v7, 4 }
 0x3dd   : > { %v1141_v52 = vpop.f32.mrf.mxu0 }
 0x3e3   : > { %v1120_v53 = vpop.f32.mrf.mxu3 }
 0x3e4   : > { %v1143_v57 = vrot.slane %v1120_v53, 4 }
 0x3eb   : > { %v1101_v55 = vpop.f32.mrf.mxu2  ;;  %v1122_v56 = vpop.f32.mrf.mxu3 }
 0x3ec   : > { %v1156_v15 = vsel %vm572_vm1, %v1155_v54, %v1101_v55  ;;  %v1157_v58 = vrot.slane %v1101_v55, 4 }
 0x3ed   : > { %v1162_v59 = vperm.slane %v1156_v15, %v2148_v18  ;;  %v1082_v60 = vpop.f32.mrf.mxu1 }
 0x3ee   : > { %v1158_v61 = vsel %vm572_vm1, %v1139_v7, %v1157_v58  ;;  %v1144_v31 = vsel %vm572_vm1, %v1143_v57, %v1082_v60  ;;  %v1145_v62 = vrot.slane %v1082_v60, 4  ;;  %v1654_v58 = vld [vmem:[%s2452_s4] sm:$0xff] }
 0x3ef   : > { %v1166_v63 = vperm.slane %v1158_v61, %v2148_v18  ;;  %v1167_v0 = vrot.slane %v1162_v59, 4  ;;  %v1150_v3 = vperm.slane %v1144_v31, %v2148_v18 }
 0x3f0   : > { %v1146_v4 = vsel %vm572_vm1, %v1120_v53, %v1145_v62 }
 0x3f1   : > { %v1179_v5 = vrot.slane %v1166_v63, 4  ;;  %v1154_v6 = vperm.slane %v1146_v4, %v2148_v18  ;;  %v1168_v11 = vsel %vm572_vm1, %v1167_v0, %v1150_v3  ;;  %v1169_v8 = vrot.slane %v1150_v3, 4  ;;  %v1746_v3 = vld [vmem:[%s2453_s5] ss:$0 sm:$0xff] }
 0x3f2   : > { %v1174_v9 = vperm.slane %v1168_v11, %v2158_v33  ;;  %v522_v4 = vunpack.c.l.bf16 %v2133_v2 }
 0x3f3   : > { %v1170_v10 = vsel %vm572_vm1, %v1162_v59, %v1169_v8  ;;  %v1180_v12 = vsel %vm572_vm1, %v1179_v5, %v1154_v6  ;;  %v1181_v13 = vrot.slane %v1154_v6, 4  ;;  %v1103_v14 = vpop.f32.mrf.mxu2 }
 0x3f4   : > { %v1178_v16 = vperm.slane %v1170_v10, %v2158_v33  ;;  %v1186_v17 = vperm.slane %v1180_v12, %v2158_v33  ;;  %v1191_v22 = vrot.slane %v1174_v9, 4  ;;  %v1919_v10 = vmov 32.0  }
 0x3f5   : > { %v1182_v19 = vsel %vm572_vm1, %v1166_v63, %v1181_v13  ;;  %v1084_v20 = vpop.f32.mrf.mxu1  ;;  %1769 = vrcp.f32 %v1919_v10 }
 0x3f6   : > { %v1190_v21 = vperm.slane %v1182_v19, %v2158_v33  ;;  %v1193_v23 = vrot.slane %v1178_v16, 4  ;;  %v1195_v25 = vrot.slane %v1186_v17, 4  ;;  %v1192_v30 = vsel %vm572_vm1, 0.0, %v1191_v22 }
 0x3f8   : > { %v1194_v24 = vsel %vm572_vm1, 0.0, %v1193_v23  ;;  %v1197_v26 = vrot.slane %v1190_v21, 4  ;;  %v1199_v27 = vsel %vm572_vm1, %v1193_v23, %v1174_v9  ;;  %v1196_v38 = vsel %vm572_vm1, 0.0, %v1195_v25  ;;  %v1656_v25 = vld [vmem:[%s2456_s8] sm:$0xff] }
 0x3f9   : > { %v1204_v28 = vrot.slane %v1194_v24, 4  ;;  %v1203_v29 = vperm.slane %v1199_v27, %v2148_v18  ;;  %v1657_v24 = vld [vmem:[%s2456_s8 + $0x8] sm:$0xff] }
 0x3fa   : > { %v1198_v32 = vsel %vm572_vm1, 0.0, %v1197_v26  ;;  %v1210_v34 = vsel %vm572_vm1, %v1197_v26, %v1186_v17  ;;  %1377 = vmatpush.bf16.msra.mxu2 %v1657_v24 }
 0x3fb   : > { %v1215_v35 = vrot.slane %v1198_v32, 4  ;;  %v1205_v36 = vsel %vm572_vm1, %v1204_v28, %v1192_v30  ;;  %v1214_v37 = vperm.slane %v1210_v34, %v2148_v18  ;;  %v1223_v40 = vrot.slane %v1203_v29, 4  ;;  %v1770_v12 = vpop.eup %1769 }
 0x3fc   : > { %v1209_v39 = vperm.slane %v1205_v36, %v2148_v18  ;;  %v1314_v13 = vmul.f32 32.0, %v1770_v12  ;;  %vm1318_vm6 = vweird.f32 %v1770_v12 }
 0x3fd   : > { %v1216_v41 = vsel %vm572_vm1, %v1215_v35, %v1196_v38  ;;  %v1235_v42 = vrot.slane %v1214_v37, 4 }
 0x3fe   : > { %v1220_v43 = vperm.slane %v1216_v41, %v2148_v18  ;;  %v1221_v44 = vrot.slane %v1209_v39, 4  ;;  %v1224_v45 = vsel %vm572_vm1, %v1209_v39, %v1223_v40  ;;  %v1315_v14 = vsub.f32 1.0, %v1314_v13  ;;  %1378 = vmatpush.bf16.msra.mxu2 %v1656_v25  ;;  %v1748_v39 = vld [vmem:[%s2455_s7] ss:$0 sm:$0xff] }
 0x3ff   : > { %v1232_v51 = vperm.slane %v1224_v45, %v2158_v33  ;;  %v1660_v45 = vld [vmem:[%s2458_s10 + $0x10] sm:$0xff] }
 0x400   : > { %v1236_v46 = vsel %vm572_vm1, %v1220_v43, %v1235_v42  ;;  %v1222_v47 = vsel %vm572_vm1, %v1221_v44, %v1203_v29  ;;  %v1233_v48 = vrot.slane %v1220_v43, 4  ;;  %v1316_v16 = vmul.f32 %v1770_v12, %v1315_v14  ;;  %v1661_v44 = vld [vmem:[%s2458_s10 + $0x18] sm:$0xff] }
 0x401   : > { %v1244_v49 = vperm.slane %v1236_v46, %v2158_v33  ;;  %v1228_v1 = vperm.slane %v1222_v47, %v2158_v33  ;;  %v1251_v57 = vrot.slane %v1232_v51, 4  ;;  %1438 = vmatpush.bf16.msra.mxu3 %v1661_v44  ;;  %v1659_v46 = vld [vmem:[%s2458_s10 + $0x8] sm:$0xff]  ;;  %v1658_v47 = vld [vmem:[%s2458_s10] sm:$0xff] }
 0x402   : > { %v1234_v50 = vsel %vm572_vm1, %v1233_v48, %v1214_v37  ;;  %v1317_v17 = vadd.f32 %v1770_v12, %v1316_v16  ;;  %v1747_v37 = vld [vmem:[%s2454_s6] ss:$0 sm:$0xff] }
 0x403   : > { %v1249_v7 = vrot.slane %v1244_v49, 4  ;;  %v1240_v52 = vperm.slane %v1234_v50, %v2158_v33  ;;  %v1247_v18 = vrot.slane %v1228_v1, 4  ;;  %v1252_v15 = vsel %vm572_vm1, %v1244_v49, %v1251_v57  ;;  %v1655_v33 = vld [vmem:[%s2452_s4 + $0x8] sm:$0xff]  ;;  %v1749_v48 = vld [vmem:[%s2457_s9] ss:$0 sm:$0xff] }
 0x404   : > { %1300 = vmatpush.bf16.msra.mxu1 %v1655_v33  ;;  %v2367_v19 = vsel %vm1318_vm6, %v1770_v12, %v1317_v17  ;;  %v1750_v33 = vld [vmem:[%s2459_s11] ss:$0 sm:$0xff] }
 0x405   : > { %v1250_v53 = vsel %vm572_vm1, %v1249_v7, %v1232_v51  ;;  %v1245_v54 = vrot.slane %v1240_v52, 4  ;;  %v1248_v55 = vsel %vm572_vm1, %v1240_v52, %v1247_v18  ;;  %1439 = vmatpush.bf16.msra.mxu3 %v1660_v45  ;;  %v1751_v16 = vld [vmem:[%s2460_s12] ss:$0 sm:$0xff] }
 0x406   : > { %1258 = vrot.lane.b32.xlu1 %v1250_v53, %s1916_s0  ;;  %1254 = vrot.lane.b32.xlu2 %v1248_v55, %s1917_s25  ;;  %s1649_s25 = sshll.u32 %s2016_s17, 2  ;;  %s519_s17 = scalar_lea.vmem [#allocation7], %s1594_s18 }
 0x407   : > { %v1246_v56 = vsel %vm572_vm1, %v1245_v54, %v1228_v1  ;;  %s1494_s19 = scalar_lea.hbm %s2488_s24, %s1649_s25  ;;  %s1496_s13 = sshll.u32 %s519_s17, 4  ;;  %s1497_s13 = int_to_ptr.vmem [resolvable:$true] %s1496_s13 }
 0x408   : > { %1301 = vmatpush.bf16.msra.mxu1 %v1654_v58  ;;  %s1498_s22 = sshll.u32 %s1494_s19, 4  ;;  %s1484_s0 = scalar_lea.sflag [#allocation4], %s2111_s27  ;;  %s1499_s22 = int_to_ptr.hbm [resolvable:$true] %s1498_s22 }
 0x409   : > { %1440 = vmatpush.bf16.msra.mxu3 %v1659_v46  ;;  %s1857_s18 = scalar_lea.hbm %s2488_s24, 8 }
 0x40d   : > { %1441 = vmatpush.bf16.msra.mxu3 %v1658_v47 }
 0x40e   : > { %1262 = vrot.lane.b32.xlu2 %v1252_v15, %s1918_s21  ;;  %s1851_s21 = sshra.s32 %s1499_s22, 4  ;;  %s1852_s21 = int_to_ptr.hbm [resolvable:$true] %s1851_s21 }
 0x40f   : > { %s1853_s29 = scalar_lea.hbm %s1852_s21, 4  ;;  %p1858_p10 = scmp.lt.s32.totalorder %s1852_s21, %s2488_s24 }
 0x410   : > { %p1854_p6 = scmp.ne.s32.totalorder %s1852_s21, %s1853_s29  ;;  %p1859_p2 = scmp.lt.s32.totalorder %s1857_s18, %s1853_s29 }
 0x412   : > { %p1855_p13 = pnand %p1854_p6, %p2045_p11  ;;  %p1860_p9 = por %p1859_p2, %p1858_p10 }
 0x414   : > { %p1856_p3 = pneg %p1855_p13 }
 0x416   : > { %p1861_p0 = pnand %p1860_p9, %p1856_p3 }
 0x460   : > { %v1255_v59 = vpop.permute.xlu2 %1254 }
 0x461   : > { %v1265_v60 = vsel %vm941_vm2, %v1246_v56, %v1255_v59 }
 0x468   : > { %v1263_v31 = vpop.permute.xlu2 %1262 }
 0x478   : > { %v1259_v61 = vpop.permute.xlu1 %1258 }
 0x479   : > { %v1267_v62 = vsel %vm1266_vm4, %v1265_v60, %v1259_v61 }
 0x47a   : > { %v1269_v63 = vsel %vm1268_vm5, %v1267_v62, %v1263_v31 }
 0x47b   : > { %v1270_v0 = vpack.c.bf16 %v1269_v63, %v1269_v63 }
 0x47d   : > { %1621 = vmatmul.msk.bf16.vlgmr.msra.gmra.mxu1 %vm544_vm0, %v1270_v0 }
 0x4fa   : > { %v1303_v5 = vpop.f32.mrf.mxu1 }
 0x4fb   : > { %v1304_v6 = vadd.f32 %v1746_v3, %v1303_v5 }
 0x4fd   : > { %v1307_v11 = vadd.f32 %v1304_v6, %v522_v4 }
 0x4ff   : > { %v1310_v8 = vsel %vm544_vm0, %v1307_v11, 0.0 }
 0x500   : > { %1311 = vadd.xlane.f32.xlu2 %v1310_v8 }
 0x502   : > { %v1305_v9 = vpop.f32.mrf.mxu1 }
 0x573   : > { %v1312_v20 = vpop.xlane.xlu2 %1311 }
 0x574   : > { %v1320_v2 = vmul.f32 %v2367_v19, %v1312_v20 }
 0x576   : > { %v1321_v21 = vsub.f32 %v1307_v11, %v1320_v2 }
 0x578   : > { %v1322_v22 = vmul.f32 %v1321_v21, %v1321_v21 }
 0x57a   : > { %v1323_v23 = vsel %vm544_vm0, %v1322_v22, 0.0 }
 0x57b   : > { %1324 = vadd.xlane.f32.xlu1 %v1323_v23 }
 0x5ee   : > { %v1325_v26 = vpop.xlane.xlu1 %1324 }
 0x5ef   : > { %v1326_v27 = vmul.f32 %v1325_v26, %v2367_v19 }
 0x5f1   : > { %v1327_v28 = vadd.f32 1e-12, %v1326_v27 }
 0x5f3   : > { %1771 = vrsqrt.f32 %v1327_v28  ;;  %vm1334_vm8 = vweird.f32 %v1327_v28 }
 0x5f9   : > { %v1772_v29 = vpop.eup %1771 }
 0x5fa   : > { %v1329_v30 = vmul.f32 %v1772_v29, %v1327_v28  ;;  %vm1335_vm7 = vweird.f32 %v1772_v29 }
 0x5fb   : > { %vm1336_vm9 = vmor %vm1334_vm8, %vm1335_vm7 }
 0x5fc   : > { %v1330_v32 = vmul.f32 %v1772_v29, %v1329_v30 }
 0x5fe   : > { %v1331_v34 = vmul.f32 0.5, %v1330_v32 }
 0x600   : > { %v1332_v35 = vsub.f32 1.5, %v1331_v34 }
 0x602   : > { %v1333_v36 = vmul.f32 %v1772_v29, %v1332_v35 }
 0x604   : > { %v1337_v38 = vsel %vm1336_vm9, %v1772_v29, %v1333_v36 }
 0x605   : > { %v1338_v40 = vmul.f32 %v1337_v38, %v1321_v21 }
 0x607   : > { %v1342_v41 = vmul.f32 %v1747_v37, %v1338_v40 }
 0x609   : > { %v1346_v42 = vadd.f32 %v1748_v39, %v1342_v41 }
 0x60b   : > { %v1347_v43 = vpack.c.bf16 %v1346_v42, %v1346_v42 }
 0x60d   : > { %1630 = vmatmul.msk.bf16.vlgmr.msra.gmra.mxu2 %vm544_vm0, %v1347_v43 }
 0x690   : > { %v1380_v49 = vpop.f32.mrf.mxu2 }
 0x691   : > { %v1381_v1 = vadd.f32 %v1749_v48, %v1380_v49 }
 0x693   : > { %v1385_v50 = vmul.f32 %v1381_v1, %v1381_v1  ;;  %v1384_v55 = vmul.f32 0.5, %v1381_v1 }
 0x695   : > { %v1386_v51 = vmul.f32 %v1385_v50, %v1381_v1 }
 0x697   : > { %v1387_v7 = vmul.f32 0.044715, %v1386_v51 }
 0x698   : > { %v1382_v52 = vpop.f32.mrf.mxu2 }
 0x699   : > { %v1388_v18 = vadd.f32 %v1387_v7, %v1381_v1 }
 0x69b   : > { %v1389_v53 = vmul.f32 0.7978846, %v1388_v18 }
 0x69d   : > { %1773 = vtanh.f32 %v1389_v53 }
 0x6a3   : > { %v1774_v54 = vpop.eup %1773 }
 0x6a4   : > { %v1391_v56 = vadd.f32 1.0, %v1774_v54 }
 0x6a6   : > { %v1392_v57 = vmul.f32 %v1391_v56, %v1384_v55 }
 0x6a8   : > { %v1393_v15 = vpack.c.bf16 %v1392_v57, %v1392_v57 }
 0x6aa   : > { %1647 = vmatmul.msk.bf16.vlgmr.msra.gmra.mxu3 %vm1430_vm10, %v1393_v15 }
 0x72d   : > { %v1443_v58 = vpop.f32.mrf.mxu3 }
 0x72e   : > { %v1444_v59 = vadd.f32 %v1750_v33, %v1443_v58 }
 0x730   : > { %v1447_v60 = vadd.f32 %v1444_v59, %v1346_v42 }
 0x732   : > { %v1450_v61 = vsel %vm544_vm0, %v1447_v60, 0.0 }
 0x733   : > { %1451 = vadd.xlane.f32.xlu0 %v1450_v61 }
 0x735   : > { %v1445_v31 = vpop.f32.mrf.mxu3 }
 0x7a6   : > { %v1452_v62 = vpop.xlane.xlu0 %1451 }
 0x7a7   : > { %v1453_v63 = vmul.f32 %v1452_v62, %v2367_v19 }
 0x7a9   : > { %v1454_v0 = vsub.f32 %v1447_v60, %v1453_v63 }
 0x7ab   : > { %v1455_v3 = vmul.f32 %v1454_v0, %v1454_v0 }
 0x7ad   : > { %v1456_v4 = vsel %vm544_vm0, %v1455_v3, 0.0 }
 0x7ae   : > { %1457 = vadd.xlane.f32.xlu0 %v1456_v4 }
 0x821   : > { %v1458_v5 = vpop.xlane.xlu0 %1457 }
 0x822   : > { %v1459_v6 = vmul.f32 %v1458_v5, %v2367_v19  ;;  %v1752_v19 = vld [vmem:[%s2487_s20] ss:$0 sm:$0xff] }
 0x824   : > { %v1460_v11 = vadd.f32 1e-12, %v1459_v6 }
 0x826   : > { %1775 = vrsqrt.f32 %v1460_v11  ;;  %vm1467_vm12 = vweird.f32 %v1460_v11 }
 0x82c   : > { %v1776_v8 = vpop.eup %1775 }
 0x82d   : > { %v1462_v9 = vmul.f32 %v1776_v8, %v1460_v11  ;;  %vm1468_vm11 = vweird.f32 %v1776_v8 }
 0x82e   : > { %vm1469_vm13 = vmor %vm1467_vm12, %vm1468_vm11 }
 0x82f   : > { %v1463_v10 = vmul.f32 %v1776_v8, %v1462_v9 }
 0x831   : > { %v1464_v12 = vmul.f32 0.5, %v1463_v10 }
 0x833   : > { %v1465_v13 = vsub.f32 1.5, %v1464_v12 }
 0x835   : > { %v1466_v14 = vmul.f32 %v1776_v8, %v1465_v13 }
 0x837   : > { %v1470_v17 = vsel %vm1469_vm13, %v1776_v8, %v1466_v14 }
 0x838   : > { %v1471_v20 = vmul.f32 %v1470_v17, %v1454_v0 }
 0x83a   : > { %v1475_v2 = vmul.f32 %v1751_v16, %v1471_v20 }
 0x83c   : > { %v1479_v21 = vadd.f32 %v1752_v19, %v1475_v2 }
 0x83e   : > { %v1480_v22 = vpack.c.bf16 %v1479_v21, %v1479_v21 }
 0x840   : > { %1482 = vst.msk [vmem:[%s519_s17] sm:$0xf] %vm1481_vm14, %v1480_v22 }
 0x841   : > { %1864 = shalt.err (!%p1861_p0)
}
 0x842   : > { %1666 = dma.vmem_to_hbm [thread:$0]  (%p2045_p11), %s1497_s13, 64, %s1499_s22, %s1484_s0  }
 0x843 PF: > { %s2490_s27 = sld [smem:[#allocation11_spill]]  ;;  %p2492_p1 = scmp.ge.s32.totalorder %s1907_s16, 2 }
 0x845   : > { %p1676_p4 = pnand %p2492_p1, %p2049_p12 }
 0x847   : > { %p1677_p7 = pneg %p1676_p4 }
 0x849   : > { %s1510_s15 = sand.u32 1, %s2490_s27  }
 0x84a   : > { %s1511_s19 = scalar_lea.sflag [#allocation4], %s1510_s15 }
 0x84b   : > { %1890 = dma.done.wait (%p1677_p7), %s1511_s19, 64  }
 0x84c   : > { %1892 = vsyncadd (%p1677_p7), %s1511_s19, 4294967232  ;;  %s2493_s16 = sld [smem:[#allocation13_spill]]  ;;  %s2496_s29 = smov %s1899_s30 }
 0x84d   : > { %s2494_s17 = sld [smem:[#allocation12_spill]] }
 0x84e   : > { %s2495_s15 = sld [smem:[#allocation14_spill]] }
 0x852   : > { %p30_p5 = scmp.ge.s32.totalorder %s2493_s16, 4  }
 0x853   : > { %s2497_s30 = smov %s2494_s17 }
 0x854   :  { %32 = sbr.rel (!%p30_p5) target bundleno = 11 (0xb), region = 134 }
 0x859   :  { %1517 = vsyncpa [#allocation3], 1 }
 0x85a   :  { %1519 = vsyncpa [#allocation3 + $0x1], 1 }
 0x85b   :  { %1520 = vsyncpa [#allocation6], 1 }
 0x85c   :  { %1522 = vsyncpa [#allocation6 + $0x1], 1 }
 0x85d   :  { %1523 = vsyncpa [#allocation4], 1 }
 0x85e   :  { %1525 = vsyncpa [#allocation4 + $0x1], 1 }

</bundles_post_ra>
